<compile_context>
chip_gen: v7x
topology: tpu7x:2x2x1
jax: 0.10.0
libtpu: 0.0.40
codegen_flags: <defaults>
</compile_context>

<pallas_src>
import functools
import math

import jax
import jax.numpy as jnp
import numpy as np
from jax.experimental import pallas as pl
from jax.experimental.pallas import tpu as pltpu


# --------------------------------------------------------------------------
# Kernel
# --------------------------------------------------------------------------
def _rope_kernel(x_ref, cos_ref, sine_ref, sino_ref, o_ref, *, num_heads):
    """out = x * cos + shift_left(x) * sin_even + shift_right(x) * sin_odd."""
    x = x_ref[...].astype(jnp.float32)                      # (1, ts, H*D)

    # Head-broadcast the (ts, D) tables to (ts, H*D) in-kernel (lane tile).
    cos = jnp.tile(cos_ref[...], (1, num_heads))
    sin_e = jnp.tile(sine_ref[...], (1, num_heads))
    sin_o = jnp.tile(sino_ref[...], (1, num_heads))

    # Adjacent-lane shifts.  The shifted-in zero column is harmless because
    # the pre-masked sin tables are zero at those parities.
    zero = jnp.zeros_like(x[..., :1])
    left = jnp.concatenate([x[..., 1:], zero], axis=-1)     # left[d]  = x[d+1]
    right = jnp.concatenate([zero, x[..., :-1]], axis=-1)   # right[d] = x[d-1]

    out = x * cos[None] + left * sin_e[None] + right * sin_o[None]
    o_ref[...] = out.astype(o_ref.dtype)


# --------------------------------------------------------------------------
# Host-side helpers
# --------------------------------------------------------------------------
_TABLE_CACHE: dict = {}


def _rope_tables(seq_len: int, head_dim: int, theta: float):
    """Memoized (S, D) f32 tables: cos (pair-repeated), sin_even, sin_odd.

    sin_even[2i] = -sin(pos * f_i), 0 on odd lanes  (multiplies shift_left(x))
    sin_odd [2i+1] = +sin(pos * f_i), 0 on even lanes (multiplies shift_right(x))
    """
    key = (int(seq_len), int(head_dim), float(theta))
    tabs = _TABLE_CACHE.get(key)
    if tabs is None:
        pos = np.arange(seq_len, dtype=np.float32)[:, None]              # (S, 1)
        freqs = np.exp(np.arange(0, head_dim, 2, dtype=np.float32)
                       * (-(math.log(theta) / head_dim)))                # (D/2,)
        sinusoid = pos * freqs                                           # (S, D/2)
        cos = np.repeat(np.cos(sinusoid), 2, axis=-1).astype(np.float32)  # (S, D)
        sin = np.sin(sinusoid).astype(np.float32)                        # (S, D/2)
        sin_e = np.zeros((seq_len, head_dim), np.float32)
        sin_o = np.zeros((seq_len, head_dim), np.float32)
        sin_e[:, 0::2] = -sin
        sin_o[:, 1::2] = sin
        tabs = (jnp.asarray(cos), jnp.asarray(sin_e), jnp.asarray(sin_o))
        _TABLE_CACHE[key] = tabs
    return tabs


def _vmem_config():
    """Generation-aware (vmem_limit_bytes, tile_budget_bytes)."""
    try:
        cap = int(pltpu.get_tpu_info().vmem_capacity_bytes)
    except Exception:
        cap = 64 << 20  # conservative default: v7x has 64 MiB per TensorCore
    if cap >= (128 << 20):                      # v5e / v6e
        limit = 96 << 20
    else:                                       # v7x or unknown / smaller
        limit = min(56 << 20, max(cap - (8 << 20), 16 << 20))
    budget = (2 * limit) // 3                   # headroom for Mosaic scratch
    return limit, budget


def _pick_seq_tile(S: int, HD: int, D: int, itemsize: int, batch: int,
                   budget: int) -> int:
    """Largest seq tile fitting the VMEM budget, with enough grid steps."""
    # Per seq row: in + out blocks double-buffered (x dtype), 3 (ts, D) f32
    # table blocks double-buffered, ~7 f32 (ts, HD) temporaries in-kernel.
    per_row = HD * 4 * itemsize + 6 * D * 4 + 7 * HD * 4
    gran = max(8, 32 // itemsize)               # sublane granularity
    ts = budget // per_row
    if ts >= S:
        ts = S
    else:
        ts = max(gran, (ts // gran) * gran)
    # Prefer >= ~8 grid steps when S allows it (feeds both v7x TensorCores and
    # keeps the DMA pipeline busy); each step stays large so the ~0.35 us
    # per-step overhead remains negligible.
    target_steps = 8
    steps = batch * ((S + ts - 1) // ts)
    if steps < target_steps and S > gran:
        want_tiles = (target_steps + batch - 1) // batch
        cand = (S + want_tiles - 1) // want_tiles
        cand = ((cand + gran - 1) // gran) * gran
        if gran <= cand < ts:
            ts = cand
    return ts


# --------------------------------------------------------------------------
# Public wrapper
# --------------------------------------------------------------------------
def rope(x: jax.Array, seq_len: int | None = None,
         theta: float = 10000.0) -> jax.Array:
    """Apply RoPE to x of shape (batch, seq, num_heads, head_dim)."""
    B, S, H, D = x.shape
    assert D % 2 == 0, "head_dim must be even for RoPE"
    del seq_len  # the torch module re-derives seq_len from x.shape as well
    HD = H * D

    # Lane-dense view: (B, S, H*D). Contiguous reshape -> no data movement.
    x3 = x.reshape(B, S, HD)

    cos_t, sin_e_t, sin_o_t = _rope_tables(S, D, theta)

    vmem_limit, budget = _vmem_config()
    itemsize = np.dtype(x.dtype).itemsize
    ts = _pick_seq_tile(S, HD, D, itemsize, B, budget)
    n_tiles = (S + ts - 1) // ts
    grid = (n_tiles, B)  # batch innermost -> table blocks resident per seq tile

    kernel = functools.partial(_rope_kernel, num_heads=H)

    out3 = pl.pallas_call(
        kernel,
        out_shape=jax.ShapeDtypeStruct((B, S, HD), x.dtype),
        grid_spec=pltpu.PrefetchScalarGridSpec(
            num_scalar_prefetch=0,
            grid=grid,
            in_specs=[
                pl.BlockSpec((1, ts, HD), lambda si, bi: (bi, si, 0)),
                pl.BlockSpec((ts, D), lambda si, bi: (si, 0)),
                pl.BlockSpec((ts, D), lambda si, bi: (si, 0)),
                pl.BlockSpec((ts, D), lambda si, bi: (si, 0)),
            ],
            out_specs=pl.BlockSpec((1, ts, HD), lambda si, bi: (bi, si, 0)),
        ),
        compiler_params=pltpu.CompilerParams(
            dimension_semantics=("parallel", "parallel"),
            vmem_limit_bytes=vmem_limit,
        ),
    )(x3, cos_t, sin_e_t, sin_o_t)

    return out3.reshape(B, S, H, D)


# --------------------------------------------------------------------------
# Pure-JAX reference (mirrors the PyTorch forward)
# --------------------------------------------------------------------------
def rope_ref(x: jax.Array, theta: float = 10000.0) -> jax.Array:
    B, S, H, D = x.shape
    pos = jnp.arange(S, dtype=jnp.float32)[:, None]
    freqs = jnp.exp(jnp.arange(0, D, 2, dtype=jnp.float32)
                    * (-(math.log(theta) / D)))
    sinusoid = pos * freqs                                # (S, D/2)
    sin = jnp.sin(sinusoid)[None, :, None, :]             # (1, S, 1, D/2)
    cos = jnp.cos(sinusoid)[None, :, None, :]
    xf = x.astype(jnp.float32)
    xe = xf[..., 0::2]
    xo = xf[..., 1::2]
    oe = xe * cos - xo * sin
    oo = xo * cos + xe * sin
    out = jnp.stack([oe, oo], axis=-1).reshape(x.shape)
    return out.astype(x.dtype)


if __name__ == "__main__":
    key0, key1 = jax.random.split(jax.random.PRNGKey(0))

    # Test 1: the module's canonical small shape (batch, seq, heads, head_dim).
    batch, seq, num_heads, head_dim = 2, 8, 4, 32
    x = jax.random.normal(key0, (batch, seq, num_heads, head_dim),
                          dtype=jnp.float32)
    out = rope(x, seq_len=seq)
    jax.block_until_ready(out)
    ref = rope_ref(x)
    assert out.shape == x.shape and out.dtype == x.dtype
    assert jnp.allclose(out, ref, atol=1e-4, rtol=1e-4)

    # Test 2: multi-vreg lane axis (H*D = 256 > 128) + ragged seq tail
    # (S = 20 splits into seq tiles of 8 -> last tile is partial).
    x2 = jax.random.normal(key1, (1, 20, 4, 64), dtype=jnp.float32)
    out2 = rope(x2)
    jax.block_until_ready(out2)
    assert jnp.allclose(out2, rope_ref(x2), atol=1e-4, rtol=1e-4)

    print("KERNEL_OK")
</pallas_src>

<mosaic_0001>
module attributes {stable_mosaic.version = 11 : i64} {
  func.func @_rope_kernel(%arg0: i32, %arg1: i32, %arg2: memref<1x8x128xf32, #tpu.memory_space<vmem>>, %arg3: memref<8x32xf32, #tpu.memory_space<vmem>>, %arg4: memref<8x32xf32, #tpu.memory_space<vmem>>, %arg5: memref<8x32xf32, #tpu.memory_space<vmem>>, %arg6: memref<1x8x128xf32, #tpu.memory_space<vmem>>) attributes {dimension_semantics = [#tpu.dimension_semantics<parallel>, #tpu.dimension_semantics<parallel>], iteration_bounds = array<i64: 1, 2>, scalar_prefetch = 0 : i64, scratch_operands = 0 : i64, tpu.core_type = #tpu.core_type<tc>, window_params = [{transform_indices = @transform_0, window_bounds = array<i64: 1, 8, 128>}, {transform_indices = @transform_1, window_bounds = array<i64: 8, 32>}, {transform_indices = @transform_2, window_bounds = array<i64: 8, 32>}, {transform_indices = @transform_3, window_bounds = array<i64: 8, 32>}, {transform_indices = @transform_4, window_bounds = array<i64: 1, 8, 128>}]} {
    %c0 = arith.constant 0 : index
    %c0_0 = arith.constant 0 : index
    %c0_1 = arith.constant 0 : index
    %0 = vector.load %arg2[%c0, %c0_0, %c0_1] : memref<1x8x128xf32, #tpu.memory_space<vmem>>, vector<1x8x128xf32>
    %c0_2 = arith.constant 0 : index
    %c0_3 = arith.constant 0 : index
    %1 = vector.load %arg3[%c0_2, %c0_3] : memref<8x32xf32, #tpu.memory_space<vmem>>, vector<8x32xf32>
    %2 = tpu.concatenate %1, %1, %1, %1 in 1 : vector<8x32xf32>, vector<8x32xf32>, vector<8x32xf32>, vector<8x32xf32> -> vector<8x128xf32>
    %c0_4 = arith.constant 0 : index
    %c0_5 = arith.constant 0 : index
    %3 = vector.load %arg4[%c0_4, %c0_5] : memref<8x32xf32, #tpu.memory_space<vmem>>, vector<8x32xf32>
    %4 = tpu.concatenate %3, %3, %3, %3 in 1 : vector<8x32xf32>, vector<8x32xf32>, vector<8x32xf32>, vector<8x32xf32> -> vector<8x128xf32>
    %c0_6 = arith.constant 0 : index
    %c0_7 = arith.constant 0 : index
    %5 = vector.load %arg5[%c0_6, %c0_7] : memref<8x32xf32, #tpu.memory_space<vmem>>, vector<8x32xf32>
    %6 = tpu.concatenate %5, %5, %5, %5 in 1 : vector<8x32xf32>, vector<8x32xf32>, vector<8x32xf32>, vector<8x32xf32> -> vector<8x128xf32>
    %cst = arith.constant 0.000000e+00 : f32
    %7 = vector.broadcast %cst : f32 to vector<1x8x1xf32>
    %8 = vector.extract_strided_slice %0 {offsets = [0, 0, 1], sizes = [1, 8, 127], strides = [1, 1, 1]} : vector<1x8x128xf32> to vector<1x8x127xf32>
    %9 = tpu.concatenate %8, %7 in 2 : vector<1x8x127xf32>, vector<1x8x1xf32> -> vector<1x8x128xf32>
    %10 = vector.extract_strided_slice %0 {offsets = [0, 0, 0], sizes = [1, 8, 127], strides = [1, 1, 1]} : vector<1x8x128xf32> to vector<1x8x127xf32>
    %11 = tpu.concatenate %7, %10 in 2 : vector<1x8x1xf32>, vector<1x8x127xf32> -> vector<1x8x128xf32>
    %12 = vector.shape_cast %2 : vector<8x128xf32> to vector<1x8x128xf32>
    %13 = arith.mulf %0, %12 : vector<1x8x128xf32>
    %14 = vector.shape_cast %4 : vector<8x128xf32> to vector<1x8x128xf32>
    %15 = arith.mulf %9, %14 : vector<1x8x128xf32>
    %16 = arith.addf %13, %15 : vector<1x8x128xf32>
    %17 = vector.shape_cast %6 : vector<8x128xf32> to vector<1x8x128xf32>
    %18 = arith.mulf %11, %17 : vector<1x8x128xf32>
    %19 = arith.addf %16, %18 : vector<1x8x128xf32>
    %c0_8 = arith.constant 0 : index
    %c0_9 = arith.constant 0 : index
    %c0_10 = arith.constant 0 : index
    %20 = vector.load %arg6[%c0_8, %c0_9, %c0_10] : memref<1x8x128xf32, #tpu.memory_space<vmem>>, vector<1x8x128xf32>
    tpu.vector_store %arg6[%c0_8, %c0_9, %c0_10], %19 {strides = array<i32>} : memref<1x8x128xf32, #tpu.memory_space<vmem>>, vector<1x8x128xf32>,
    return
  }
  func.func @transform_0(%arg0: i32, %arg1: i32) -> (i32, i32, i32) {
    %c0_i32 = arith.constant 0 : i32
    %c0_i32_0 = arith.constant 0 : i32
    return %arg1, %arg0, %c0_i32 : i32, i32, i32
  }
  func.func @transform_1(%arg0: i32, %arg1: i32) -> (i32, i32) {
    %c0_i32 = arith.constant 0 : i32
    %c0_i32_0 = arith.constant 0 : i32
    return %arg0, %c0_i32 : i32, i32
  }
  func.func @transform_2(%arg0: i32, %arg1: i32) -> (i32, i32) {
    %c0_i32 = arith.constant 0 : i32
    %c0_i32_0 = arith.constant 0 : i32
    return %arg0, %c0_i32 : i32, i32
  }
  func.func @transform_3(%arg0: i32, %arg1: i32) -> (i32, i32) {
    %c0_i32 = arith.constant 0 : i32
    %c0_i32_0 = arith.constant 0 : i32
    return %arg0, %c0_i32 : i32, i32
  }
  func.func @transform_4(%arg0: i32, %arg1: i32) -> (i32, i32, i32) {
    %c0_i32 = arith.constant 0 : i32
    %c0_i32_0 = arith.constant 0 : i32
    return %arg1, %arg0, %c0_i32 : i32, i32, i32
  }
}

</mosaic_0001>

<bundles_post_ra>
// kernel: tpu_custom_call.1
= control target key start
LH: loop header
LB: loop body
LE: loop exit
PB: predicated region body
PF: predicated region fallthrough
CT: control target
= control target key end

     0   :  { %9 = vsyncpa [#allocation3], 0  ;;  %s1046_s0 = inlined_call_operand.hbm [shape: f32[2,8,128], index: 0, kind: input, shape index: {}]   ;;  %s1047_s1 = inlined_call_operand.hbm [shape: f32[8,32], index: 1, kind: input, shape index: {}]   ;;  %s1048_s2 = inlined_call_operand.hbm [shape: f32[8,32], index: 2, kind: input, shape index: {}]   ;;  %s1049_s3 = inlined_call_operand.vmem [shape: f32[8,32], index: 3, kind: input, shape index: {}]   ;;  %s1050_s4 = inlined_call_operand.hbm [shape: f32[2,8,128], index: 4, kind: output, shape index: {}]  }
   0x1   :  { %11 = vsyncpa [#allocation3 + $0x1], 0 }
   0x2   :  { %12 = vsyncpa [#allocation6], 0 }
   0x3   :  { %13 = vsyncpa [#allocation4], 0 }
   0x4   :  { %15 = vsyncpa [#allocation4 + $0x1], 0  ;;  %s796_s15 = smov 0   ;;  %s798_s16 = smov 0  }
   0x5   :  { %s800_s17 = smov 0   ;;  %s802_s18 = smov 0  }
   0x6   :  { %s804_s19 = smov 0   ;;  %s806_s20 = smov 0  }
   0x7 LB: > { %s482_s21 = sadd.s32 4294967295, %s760_s20   ;;  %s483_s22 = sadd.s32 4294967294, %s760_s20   ;;  %s760_s20 = sphi %s806_s20, %s21_s20   ;;  %s756_s19 = sphi %s804_s19, %s1073_s19   ;;  %s752_s18 = sphi %s802_s18, %s1072_s18   ;;  %s748_s17 = sphi %s800_s17, %s1071_s17   ;;  %s744_s16 = sphi %s798_s16, %s1070_s16   ;;  %s740_s15 = sphi %s796_s15, %s1069_s15  }
   0x8   : > { %p55_p0 = scmp.ne.s32.totalorder %s744_s16, %s740_s15  ;;  %p830_p1 = scmp.eq.s32.totalorder %s482_s21, 0 }
   0x9   : > { %p834_p2 = scmp.eq.s32.totalorder %s482_s21, 1  ;;  %p165_p3 = scmp.eq.s32.totalorder %s483_s22, 1 }
   0xa   : > { %s1055_s23 = scalar_select %p830_p1, 1, 0 }
   0xb   : > { %s1056_s24 = scalar_select %p834_p2, 1, 0 }
   0xc   : > { %p840_p4 = por %p830_p1, %p55_p0  ;;  %p484_p5 = scmp.ge.s32.totalorder %s760_s20, 1 }
   0xd   : > { %p845_p6 = por %p165_p3, %p55_p0  ;;  %p172_p7 = scmp.lt.s32.totalorder %s760_s20, 3 }
   0xe   : > { %s1057_s25 = scalar_select %p840_p4, 1, 0 }
   0xf   : > { %s1058_s26 = scalar_select %p845_p6, 1, 0 }
  0x10   : > { %p850_p8 = pnand %p484_p5, %p172_p7  ;;  %s762_s28 = smov [#allocation5]  }
  0x11   : > { %s187_s29 = sshll.u32 %s762_s28, 4  ;;  %s763_s30 = smov [#allocation7]   ;;  %s188_s29 = int_to_ptr.vmem [resolvable:$true] %s187_s29 }
  0x12   : > { %s1059_s27 = scalar_select %p850_p8, 1, 0 }
  0x13   : > { %p512_p10 = pneg %p850_p8  ;;  %s200_s5 = sshll.u32 %s763_s30, 4  ;;  %s863_s5 = int_to_ptr.vmem [resolvable:$true] %s200_s5 }
  0x14   : > { %s588_s9 = scalar_lea.hbm %s1047_s1, 128 }
  0x15   : > { %p859_p11 = pnand %p512_p10, %p830_p1  ;;  %p589_p12 = scmp.ne.s32.totalorder %s1047_s1, %s588_s9 }
  0x16   : > { %p595_p5 = scmp.lt.u32.totalorder %s588_s9, %s1047_s1 }
  0x17   : > { %p590_p13 = pneg %p859_p11 }
  0x19   : > { %p591_p0 = pnand %p590_p13, %p589_p12 }
  0x1b   : > { %p592_p3 = pneg %p591_p0 }
  0x1d   : > { %p597_p7 = pnand %p595_p5, %p592_p3 }
  0x1f   : > { %600 = shalt.err (!%p597_p7)
}
  0x20   : > { %s601_s14 = scalar_lea.vmem %s188_s29, 128  ;;  %p609_p1 = scmp.lt.s32.totalorder %s188_s29, %s188_s29 }
  0x21   : > { %p602_p10 = scmp.ne.s32.totalorder %s188_s29, %s601_s14  ;;  %p610_p4 = scmp.lt.s32.totalorder %s601_s14, %s601_s14 }
  0x23   : > { %p604_p9 = pnand %p602_p10, %p590_p13  ;;  %p611_p8 = por %p610_p4, %p609_p1 }
  0x25   : > { %p605_p6 = pneg %p604_p9 }
  0x27   : > { %p612_p2 = pnand %p611_p8, %p605_p6 }
  0x29   : > { %615 = shalt.err (!%p612_p2)
}
  0x2a   : > { %515 = dma.hbm_to_vmem [thread:$0]  (!%p859_p11), %s1047_s1, 128, %s188_s29, [#allocation6]  }
  0x2b   : > { %s616_s7 = scalar_lea.hbm %s1048_s2, 128 }
  0x2c   : > { %p617_p9 = scmp.ne.s32.totalorder %s1048_s2, %s616_s7  ;;  %p623_p2 = scmp.lt.u32.totalorder %s616_s7, %s1048_s2 }
  0x2e   : > { %p619_p1 = pnand %p617_p9, %p590_p13 }
  0x30   : > { %p620_p4 = pneg %p619_p1 }
  0x32   : > { %p625_p6 = pnand %p623_p2, %p620_p4 }
  0x34   : > { %628 = shalt.err (!%p625_p6)
}
  0x35   : > { %s629_s29 = scalar_lea.vmem %s863_s5, 128  ;;  %p637_p3 = scmp.lt.s32.totalorder %s863_s5, %s863_s5 }
  0x36   : > { %p630_p8 = scmp.ne.s32.totalorder %s863_s5, %s629_s29  ;;  %p638_p5 = scmp.lt.s32.totalorder %s629_s29, %s629_s29 }
  0x38   : > { %p632_p12 = pnand %p630_p8, %p590_p13  ;;  %p639_p7 = por %p638_p5, %p637_p3 }
  0x3a   : > { %p633_p0 = pneg %p632_p12 }
  0x3c   : > { %p640_p10 = pnand %p639_p7, %p633_p0 }
  0x3e   : > { %643 = shalt.err (!%p640_p10)
}
  0x3f   : > { %518 = dma.hbm_to_vmem [thread:$0]  (!%p859_p11), %s1048_s2, 128, %s863_s5, [#allocation6]  }
  0x40   : > { %s30_s14 = sadd.s32 1, %s756_s19  ;;  %s42_s21 = sadd.s32 1, %s748_s17 }
  0x41   : > { %p31_p13 = scmp.ge.s32.totalorder %s30_s14, 2  ;;  %p49_p9 = scmp.ne.s32.totalorder %s748_s17, %s744_s16 }
  0x42   : > { %p50_p1 = scmp.eq.s32.totalorder %s760_s20, 0  ;;  %p529_p4 = scmp.lt.s32.totalorder %s760_s20, 2 }
  0x43   : > { %s1075_s14 = smov (%p31_p13, %s30_s14), 0  ;;  %p1061_p6 = scmp.ne.s32.totalorder %s1056_s24, 0 }
  0x44   : > { %p51_p2 = por %p50_p1, %p49_p9  ;;  %s37_s22 = ssub.s32 %s756_s19, %s1075_s14 }
  0x45   : > { %p922_p8 = por %p1061_p6, %p49_p9  ;;  %s218_s28 = sand.u32 1, %s748_s17  }
  0x46   : > { %p40_p12 = scmp.eq.s32.totalorder %s37_s22, 0  ;;  %s489_s5 = sshll.u32 %s218_s28, 3 }
  0x47   : > { %s490_s30 = sshll.u32 %s756_s19, 7  ;;  %s222_s24 = scalar_lea.vmem [#allocation2], %s489_s5 }
  0x48   : > { %s931_s7 = scalar_select %p40_p12, %s748_s17, %s42_s21  }
  0x49   : > { %s936_s10 = scalar_lea.hbm %s1046_s0, %s490_s30  ;;  %s230_s11 = sshll.u32 %s222_s24, 4  ;;  %s944_s11 = int_to_ptr.vmem [resolvable:$true] %s230_s11 }
  0x4a   : > { %p940_p11 = pnand %p529_p4, %p51_p2  ;;  %s219_s12 = scalar_lea.sflag [#allocation3], %s218_s28 }
  0x4b   : > { %s644_s13 = scalar_lea.hbm %s936_s10, 128  ;;  %s649_s5 = scalar_lea.hbm %s1046_s0, 256 }
  0x4c   : > { %p645_p0 = scmp.ne.s32.totalorder %s936_s10, %s644_s13  ;;  %p646_p3 = pneg %p940_p11 }
  0x4d   : > { %p650_p10 = scmp.lt.u32.totalorder %s936_s10, %s1046_s0  ;;  %p651_p13 = scmp.lt.u32.totalorder %s649_s5, %s644_s13 }
  0x4e   : > { %p647_p5 = pnand %p646_p3, %p645_p0  ;;  %p653_p1 = scmp.lt.u32.totalorder %s644_s13, %s936_s10 }
  0x4f   : > { %p652_p9 = por %p651_p13, %p650_p10 }
  0x50   : > { %p648_p7 = pneg %p647_p5 }
  0x51   : > { %p654_p4 = por %p653_p1, %p652_p9 }
  0x53   : > { %p655_p2 = pnand %p654_p4, %p648_p7 }
  0x55   : > { %658 = shalt.err (!%p655_p2)
}
  0x56   : > { %s659_s28 = scalar_lea.vmem %s944_s11, 128  ;;  %s764_s9 = smov [#allocation2]  }
  0x57   : > { %p660_p6 = scmp.ne.s32.totalorder %s944_s11, %s659_s28  ;;  %s664_s24 = sshll.u32 %s764_s9, 4  ;;  %s665_s24 = int_to_ptr.vmem [resolvable:$false] %s664_s24 }
  0x58   : > { %s666_s21 = scalar_lea.vmem %s665_s24, 256  ;;  %p667_p5 = scmp.lt.s32.totalorder %s944_s11, %s665_s24 }
  0x59   : > { %p662_p12 = pnand %p660_p6, %p646_p3  ;;  %p668_p10 = scmp.lt.s32.totalorder %s666_s21, %s659_s28 }
  0x5b   : > { %p663_p0 = pneg %p662_p12  ;;  %p669_p13 = por %p668_p10, %p667_p5 }
  0x5d   : > { %p670_p9 = pnand %p669_p13, %p663_p0 }
  0x5f   : > { %673 = shalt.err (!%p670_p9)
}
  0x60   : > { %522 = dma.hbm_to_vmem [thread:$0]  (!%p940_p11), %s936_s10, 128, %s944_s11, %s219_s12  }
  0x61   : > { %p1064_p7 = scmp.ne.s32.totalorder %s1059_s27, 0 }
  0x62   : > { %s974_s13 = sand.u32 (!%p1064_p7), 1, %s744_s16   ;;  %p1065_p3 = scmp.ne.s32.totalorder (!%p1064_p7), %s1057_s25, 0 }
  0x63   : > { %239 = sbr.rel (%p1064_p7) target bundleno = 265 (0x109), region = 36  ;;  %s492_s22 = sshll.u32 (!%p1064_p7), %s974_s13, 3 }
  0x64   : > { %s242_s5 = scalar_lea.sflag (!%p1064_p7), [#allocation3], %s974_s13  ;;  %s245_s30 = scalar_lea.vmem (!%p1064_p7), [#allocation2], %s492_s22 }
  0x6a   : > { %727 = dma.done.wait (%p1065_p3), %s242_s5, 128  }
  0x6b   : > { %729 = vsyncadd (%p1065_p3), %s242_s5, 4294967168  ;;  %p1066_p11 = scmp.ne.s32.totalorder %s1055_s23, 0 }
  0x6d   : > { %731 = dma.done.wait (%p1066_p11), [#allocation6], 256  }
  0x6e   : > { %733 = vsyncadd (%p1066_p11), [#allocation6], 4294967040  ;;  %v287_v0 = vld [vmem:[#allocation5] sm:$0xff]  ;;  %s765_s27 = smov 64   ;;  %s766_s10 = smov 32   ;;  %v304_v1 = vld [vmem:[#allocation7] sm:$0xff] }
  0x6f   : > { %292 = vrot.lane.b32.xlu1 %v287_v0, %s765_s27  ;;  %289 = vrot.lane.b32.xlu0 %v287_v0, %s766_s10  ;;  %s767_s11 = smov 96   ;;  %v318_v2 = vld [vmem:[%s1049_s3] sm:$0xff]  ;;  %s768_s12 = smov 127   ;;  %vm298_vm0 = vcmask 261120   ;;  %vm336_vm1 = vcmask 1039360   ;;  %vm300_vm2 = vcmask 523264  }
  0x70   : > { %v286_v3 = vld [vmem:[%s245_s30] sm:$0xff]  ;;  %s769_s23 = smov 1   ;;  %vm302_vm3 = vcmask 785408   ;;  %vm341_vm4 = vcmask 7168   ;;  %s497_s8 = sshll.u32 %s752_s18, 7 }
  0x71   : > { %s281_s28 = scalar_lea.vmem [#allocation8], %s492_s22  ;;  %s997_s5 = scalar_lea.hbm %s1050_s4, %s497_s8 }
  0x72   : > { %s364_s9 = sshll.u32 %s281_s28, 4  ;;  %s350_s30 = scalar_lea.sflag [#allocation4], %s974_s13  ;;  %s999_s9 = int_to_ptr.vmem [resolvable:$true] %s364_s9 }
  0x73   : > { %309 = vrot.lane.b32.xlu1 %v304_v1, %s765_s27  ;;  %306 = vrot.lane.b32.xlu0 %v304_v1, %s766_s10  ;;  %s770_s18 = smov [#allocation8]  }
  0x74   : > { %s678_s22 = sshll.u32 %s770_s18, 4  ;;  %s679_s22 = int_to_ptr.vmem [resolvable:$false] %s678_s22 }
  0x75   : > { %p681_p6 = scmp.lt.s32.totalorder %s999_s9, %s679_s22 }
  0x77   : > { %312 = vrot.lane.b32.xlu1 %v304_v1, %s767_s11  ;;  %295 = vrot.lane.b32.xlu0 %v287_v0, %s767_s11 }
  0x7b   : > { %320 = vrot.lane.b32.xlu0 %v318_v2, %s766_s10  ;;  %333 = vrot.lane.b32.xlu1 %v286_v3, %s768_s12  ;;  %s680_s10 = scalar_lea.vmem %s679_s22, 256 }
  0x7f   : > { %323 = vrot.lane.b32.xlu0 %v318_v2, %s765_s27  ;;  %326 = vrot.lane.b32.xlu1 %v318_v2, %s767_s11  ;;  %s674_s27 = scalar_lea.vmem %s999_s9, 128 }
  0x80   : > { %p675_p1 = scmp.ne.s32.totalorder %s999_s9, %s674_s27  ;;  %p682_p12 = scmp.lt.s32.totalorder %s680_s10, %s674_s27 }
  0x82   : > { %p676_p4 = pnand %p675_p1, %p922_p8  ;;  %p683_p0 = por %p682_p12, %p681_p6 }
  0x83   : > { %338 = vrot.lane.b32.xlu0 %v286_v3, %s769_s23 }
  0x84   : > { %p677_p2 = pneg %p676_p4 }
  0x86   : > { %p684_p5 = pnand %p683_p0, %p677_p2 }
  0xe1   : > { %v293_v4 = vpop.permute.xlu1 %292  ;;  %v290_v5 = vpop.permute.xlu0 %289 }
  0xe2   : > { %v299_v12 = vsel %vm298_vm0, %v287_v0, %v290_v5 }
  0xe3   : > { %v301_v16 = vsel %vm300_vm2, %v299_v12, %v293_v4 }
  0xe5   : > { %v310_v6 = vpop.permute.xlu1 %309  ;;  %v307_v7 = vpop.permute.xlu0 %306 }
  0xe6   : > { %v315_v13 = vsel %vm298_vm0, %v304_v1, %v307_v7 }
  0xe7   : > { %v316_v15 = vsel %vm300_vm2, %v315_v13, %v310_v6 }
  0xe9   : > { %v313_v8 = vpop.permute.xlu1 %312  ;;  %v296_v9 = vpop.permute.xlu0 %295 }
  0xea   : > { %v317_v18 = vsel %vm302_vm3, %v316_v15, %v313_v8  ;;  %v303_v19 = vsel %vm302_vm3, %v301_v16, %v296_v9 }
  0xeb   : > { %v343_v24 = vmul.f32 %v303_v19, %v286_v3 }
  0xed   : > { %v321_v10 = vpop.permute.xlu0 %320  ;;  %v334_v11 = vpop.permute.xlu1 %333 }
  0xee   : > { %v337_v14 = vsel %vm336_vm1, %v334_v11, 0.0  ;;  %v329_v20 = vsel %vm298_vm0, %v318_v2, %v321_v10 }
  0xef   : > { %v344_v21 = vmul.f32 %v337_v14, %v317_v18 }
  0xf1   : > { %v324_v17 = vpop.permute.xlu0 %323  ;;  %v327_v23 = vpop.permute.xlu1 %326  ;;  %v345_v28 = vadd.f32 %v344_v21, %v343_v24 }
  0xf2   : > { %v330_v22 = vsel %vm300_vm2, %v329_v20, %v324_v17 }
  0xf3   : > { %v331_v26 = vsel %vm302_vm3, %v330_v22, %v327_v23 }
  0xf5   : > { %v339_v25 = vpop.permute.xlu0 %338 }
  0xf6   : > { %v342_v27 = vsel %vm341_vm4, 0.0, %v339_v25 }
  0xf7   : > { %v346_v29 = vmul.f32 %v342_v27, %v331_v26 }
  0xf9   : > { %v347_v30 = vadd.f32 %v346_v29, %v345_v28 }
  0xfb   : > { %348 = vst [vmem:[%s281_s28] sm:$0xff] %v347_v30 }
  0xfc   : > { %687 = shalt.err (!%p684_p5)
}
  0xfd   : > { %s688_s13 = scalar_lea.hbm %s997_s5, 128  ;;  %s692_s25 = scalar_lea.hbm %s1050_s4, 256 }
  0xfe   : > { %p689_p10 = scmp.ne.s32.totalorder %s997_s5, %s688_s13  ;;  %p693_p7 = scmp.lt.u32.totalorder %s997_s5, %s1050_s4 }
  0xff   : > { %p694_p3 = scmp.lt.u32.totalorder %s692_s25, %s688_s13  ;;  %p696_p1 = scmp.lt.u32.totalorder %s688_s13, %s997_s5 }
 0x100   : > { %p690_p13 = pnand %p689_p10, %p922_p8 }
 0x101   : > { %p695_p11 = por %p694_p3, %p693_p7 }
 0x102   : > { %p691_p9 = pneg %p690_p13 }
 0x103   : > { %p697_p4 = por %p696_p1, %p695_p11 }
 0x105   : > { %p698_p2 = pnand %p697_p4, %p691_p9 }
 0x107   : > { %701 = shalt.err (!%p698_p2)
}
 0x108   : > { %510 = dma.vmem_to_hbm [thread:$0]  (%p922_p8), %s999_s9, 128, %s997_s5, %s350_s30  }
 0x109 PF: > { %s376_s8 = sand.u32 1, %s740_s15   ;;  %p1067_p6 = scmp.ne.s32.totalorder %s1058_s26, 0 }
 0x10a   : > { %p1068_p12 = scmp.ge.s32.totalorder %s760_s20, 2  ;;  %s377_s28 = scalar_lea.sflag [#allocation4], %s376_s8 }
 0x10c   : > { %p524_p0 = pnand %p1068_p12, %p1067_p6 }
 0x10e   : > { %735 = dma.done.wait (!%p524_p0), %s377_s28, 128  }
 0x10f   : > { %737 = vsyncadd (!%p524_p0), %s377_s28, 4294967168  ;;  %s21_s20 = sadd.s32 1, %s760_s20   ;;  %s1069_s15 = smov %s744_s16 }
 0x110   : > { %p18_p5 = scmp.ge.s32.totalorder %s21_s20, 4   ;;  %s1070_s16 = smov %s748_s17 }
 0x111   : > { %s1071_s17 = smov %s931_s7  ;;  %s1072_s18 = smov %s756_s19 }
 0x112   : > { %s1073_s19 = smov %s1075_s14  ;;  %20 = sbr.rel (!%p18_p5) target bundleno = 7 (0x7), region = 94 }
 0x119   :  { %382 = vsyncpa [#allocation3], 1 }
 0x11a   :  { %384 = vsyncpa [#allocation3 + $0x1], 1 }
 0x11b   :  { %385 = vsyncpa [#allocation6], 1 }
 0x11c   :  { %386 = vsyncpa [#allocation4], 1 }
 0x11d   :  { %388 = vsyncpa [#allocation4 + $0x1], 1 }

</bundles_post_ra>
